<compile_context>
chip_gen: v6e
topology: v6e:2x2x1
jax: 0.10.0
libtpu: 0.0.40
codegen_flags: <defaults>
</compile_context>

<pallas_src>
import jax
import jax.numpy as jnp
from jax.experimental import pallas as pl
from jax.experimental.pallas import tpu as pltpu

LANES = 128           # vreg lane width; last dim of the lane-dense slab
MAX_BLOCK_ROWS = 2048  # (2048,128) f32 tile = 1 MiB; 4 MiB double-buffered in+out
SMALL_N = 262_144     # below this, fused XLA elementwise wins (launch overhead)


def _affine_kernel(wb_ref, x_ref, o_ref):
    # wb_ref: (2,) f32 in SMEM -> [w00, b0]
    # x_ref, o_ref: (block_rows, 128) f32 tiles in VMEM
    o_ref[...] = x_ref[...] * wb_ref[0] + wb_ref[1]


def _round_up(x, m):
    return ((x + m - 1) // m) * m


def _affine_pallas_2d(x2d, wb):
    """Elementwise y = x*w + b on a lane-dense (rows, 128) f32 slab."""
    rows, _ = x2d.shape
    # Keep >= 2 grid steps when possible (v7x: 2 TensorCores share the
    # 'parallel' axis), cap the tile at MAX_BLOCK_ROWS, keep 8-row alignment.
    block_rows = min(MAX_BLOCK_ROWS, max(8, _round_up(pl.cdiv(rows, 2), 8)))
    grid = (pl.cdiv(rows, block_rows),)  # ragged last block is masked by Pallas
    return pl.pallas_call(
        _affine_kernel,
        out_shape=jax.ShapeDtypeStruct((rows, LANES), jnp.float32),
        grid_spec=pl.GridSpec(
            grid=grid,
            in_specs=[
                pl.BlockSpec(memory_space=pltpu.MemorySpace.SMEM),    # [w, b]
                pl.BlockSpec((block_rows, LANES), lambda i: (i, 0)),  # x tile
            ],
            out_specs=pl.BlockSpec((block_rows, LANES), lambda i: (i, 0)),
        ),
        compiler_params=pltpu.CompilerParams(
            dimension_semantics=("parallel",),  # independent batch tiles
        ),
    )(wb, x2d)


def linear_1x1(x, w, b, *, min_pallas_elems=SMALL_N):
    """y = x @ w.T + b with w: (1,1), b: (1,).  x: (N,1) -> (N,1) float32."""
    n = x.shape[0]
    w0 = jnp.asarray(w, jnp.float32).reshape(-1)[0]
    b0 = jnp.asarray(b, jnp.float32).reshape(-1)[0]
    xf = x.astype(jnp.float32).reshape(-1)  # (N,) -- free reshape

    m = (n // LANES) * LANES  # 128-aligned prefix length
    # Small inputs (or nothing aligned to hand the kernel): plain fused XLA.
    if n < min_pallas_elems or m == 0:
        return (xf * w0 + b0).reshape(n, 1)

    wb = jnp.stack([w0, b0])  # (2,) f32 -> SMEM

    if m == n:
        # Fully zero-copy path: reshape in, kernel, reshape out (bitcasts).
        x2d = xf.reshape(m // LANES, LANES)
        y = _affine_pallas_2d(x2d, wb).reshape(m)
    else:
        # Ragged N: kernel on the aligned prefix, <128-element tail in JAX.
        # (The prefix slice + final concatenate are the only extra copies.)
        x2d = xf[:m].reshape(m // LANES, LANES)
        y_main = _affine_pallas_2d(x2d, wb).reshape(m)
        y_tail = xf[m:] * w0 + b0
        y = jnp.concatenate([y_main, y_tail])

    return y.reshape(n, 1)


if __name__ == "__main__":
    key = jax.random.PRNGKey(0)
    kw, kb, k1, k2, k3, k4, k5 = jax.random.split(key, 7)

    # Linear(1,1) params, mimicking PyTorch's U(-1/sqrt(1), 1/sqrt(1)) init.
    w = jax.random.uniform(kw, (1, 1), jnp.float32, minval=-1.0, maxval=1.0)
    b = jax.random.uniform(kb, (1,), jnp.float32, minval=-1.0, maxval=1.0)

    def ref(x):
        return x.astype(jnp.float32) @ w.T + b

    # 1) Tiny batch (typical toy usage): plain-JAX fast path.
    x_small = jax.random.normal(k1, (8, 1), jnp.float32)
    y_small = jax.block_until_ready(linear_1x1(x_small, w, b))
    assert jnp.allclose(y_small, ref(x_small), atol=1e-6)

    # 2) 128-aligned batch, kernel forced: fully zero-copy, 2-step grid.
    x_al = jax.random.normal(k2, (4096, 1), jnp.float32)
    y_al = jax.block_until_ready(linear_1x1(x_al, w, b, min_pallas_elems=1))
    assert jnp.allclose(y_al, ref(x_al), atol=1e-6)

    # 3) Ragged batch, kernel forced: aligned prefix via kernel, 20-elem tail in JAX.
    x_rag = jax.random.normal(k3, (4500, 1), jnp.float32)
    y_rag = jax.block_until_ready(linear_1x1(x_rag, w, b, min_pallas_elems=1))
    assert jnp.allclose(y_rag, ref(x_rag), atol=1e-6)

    # 4) Large aligned batch hitting the default threshold: zero-copy kernel path.
    x_big = jax.random.normal(k4, (262_144, 1), jnp.float32)
    y_big = jax.block_until_ready(linear_1x1(x_big, w, b))
    assert jnp.allclose(y_big, ref(x_big), atol=1e-6)

    # 5) Large ragged batch: multi-step pipelined grid with masked last block.
    x_big2 = jax.random.normal(k5, (300_000, 1), jnp.float32)
    y_big2 = jax.block_until_ready(linear_1x1(x_big2, w, b))
    assert jnp.allclose(y_big2, ref(x_big2), atol=1e-6)

    print("KERNEL_OK")
</pallas_src>

<mosaic_0001>
module attributes {stable_mosaic.version = 11 : i64} {
  func.func @_affine_kernel(%arg0: i32, %arg1: memref<2xf32, #tpu.memory_space<smem>>, %arg2: memref<16x128xf32, #tpu.memory_space<vmem>>, %arg3: memref<16x128xf32, #tpu.memory_space<vmem>>) attributes {dimension_semantics = [#tpu.dimension_semantics<parallel>], iteration_bounds = array<i64: 2>, scalar_prefetch = 0 : i64, scratch_operands = 0 : i64, tpu.core_type = #tpu.core_type<tc>, window_params = [{transform_indices = @transform_0, window_bounds = array<i64: 2>}, {transform_indices = @transform_1, window_bounds = array<i64: 16, 128>}, {transform_indices = @transform_2, window_bounds = array<i64: 16, 128>}]} {
    %c0 = arith.constant 0 : index
    %c0_0 = arith.constant 0 : index
    %0 = vector.load %arg2[%c0, %c0_0] : memref<16x128xf32, #tpu.memory_space<vmem>>, vector<16x128xf32>
    %c0_1 = arith.constant 0 : index
    %1 = memref.load %arg1[%c0_1] : memref<2xf32, #tpu.memory_space<smem>>
    %2 = vector.broadcast %1 : f32 to vector<16x128xf32>
    %3 = arith.mulf %0, %2 : vector<16x128xf32>
    %c1 = arith.constant 1 : index
    %4 = memref.load %arg1[%c1] : memref<2xf32, #tpu.memory_space<smem>>
    %5 = vector.broadcast %4 : f32 to vector<16x128xf32>
    %6 = arith.addf %3, %5 : vector<16x128xf32>
    %c0_2 = arith.constant 0 : index
    %c0_3 = arith.constant 0 : index
    %7 = vector.load %arg3[%c0_2, %c0_3] : memref<16x128xf32, #tpu.memory_space<vmem>>, vector<16x128xf32>
    tpu.vector_store %arg3[%c0_2, %c0_3], %6 {strides = array<i32>} : memref<16x128xf32, #tpu.memory_space<vmem>>, vector<16x128xf32>,
    return
  }
  func.func @transform_0(%arg0: i32) -> i32 {
    %c0_i32 = arith.constant 0 : i32
    %c0_i32_0 = arith.constant 0 : i32
    return %c0_i32 : i32
  }
  func.func @transform_1(%arg0: i32) -> (i32, i32) {
    %c0_i32 = arith.constant 0 : i32
    %c0_i32_0 = arith.constant 0 : i32
    return %arg0, %c0_i32 : i32, i32
  }
  func.func @transform_2(%arg0: i32) -> (i32, i32) {
    %c0_i32 = arith.constant 0 : i32
    %c0_i32_0 = arith.constant 0 : i32
    return %arg0, %c0_i32 : i32, i32
  }
}

</mosaic_0001>

<bundles_post_ra>
// kernel: tpu_custom_call.1
= control target key start
LH: loop header
LB: loop body
LE: loop exit
PB: predicated region body
PF: predicated region fallthrough
CT: control target
= control target key end

     0   :  { %7 = vsyncpa [#allocation5], 0  ;;  %s671_s0 = inlined_call_operand.hbm [shape: f32[2], index: 0, kind: input, shape index: {}]   ;;  %s672_s1 = inlined_call_operand.hbm [shape: f32[32,128], index: 1, kind: input, shape index: {}]   ;;  %s673_s2 = inlined_call_operand.hbm [shape: f32[32,128], index: 2, kind: output, shape index: {}]  }
   0x1   :  { %8 = vsyncpa [#allocation3], 0 }
   0x2   :  { %10 = vsyncpa [#allocation3 + $0x1], 0 }
   0x3   :  { %11 = vsyncpa [#allocation4], 0 }
   0x4   :  { %13 = vsyncpa [#allocation4 + $0x1], 0  ;;  %s498_s9 = smov 0   ;;  %s500_s10 = smov 0  }
   0x5   :  { %s502_s11 = smov 0   ;;  %s504_s12 = smov 0  }
   0x6 LB: > { %s519_s13 = sadd.s32 4294967295, %s474_s12   ;;  %s287_s14 = sadd.s32 4294967294, %s474_s12   ;;  %s474_s12 = sphi %s504_s12, %s695_s12   ;;  %s470_s11 = sphi %s502_s11, %s694_s11   ;;  %s466_s10 = sphi %s500_s10, %s693_s10   ;;  %s462_s9 = sphi %s498_s9, %s692_s9  }
   0x7   : > { %s523_s15 = sadd.s32 1, %s474_s12   ;;  %s47_s16 = sadd.s32 1, %s470_s11 }
   0x8   : > { %s44_s17 = ssub.s32 %s474_s12, %s523_s15  ;;  %p54_p0 = scmp.ne.s32.totalorder %s470_s11, %s466_s10 }
   0x9   : > { %p45_p1 = scmp.eq.s32.totalorder %s44_s17, 0  ;;  %p55_p2 = scmp.eq.s32.totalorder %s474_s12, 0 }
   0xa   : > { %p60_p3 = scmp.ne.s32.totalorder %s466_s10, %s462_s9  ;;  %p674_p4 = scmp.eq.s32.totalorder %s519_s13, 0 }
   0xb   : > { %s535_s18 = scalar_select %p45_p1, %s470_s11, %s47_s16  }
   0xc   : > { %p537_p5 = por %p55_p2, %p54_p0  ;;  %p543_p6 = por %p674_p4, %p60_p3 }
   0xd   : > { %p84_p7 = scmp.eq.s32.totalorder %s519_s13, 1  ;;  %p90_p8 = scmp.eq.s32.totalorder %s287_s14, 1 }
   0xe   : > { %s679_s20 = scalar_select %p543_p6, 1, 0 }
   0xf   : > { %p288_p9 = scmp.ge.s32.totalorder %s474_s12, 1  ;;  %p97_p10 = scmp.lt.s32.totalorder %s474_s12, 3 }
  0x10   : > { %p550_p11 = por %p84_p7, %p54_p0  ;;  %p554_p12 = por %p90_p8, %p60_p3 }
  0x11   : > { %p558_p13 = pnand %p288_p9, %p97_p10  ;;  %p327_p4 = scmp.lt.s32.totalorder %s474_s12, 2 }
  0x12   : > { %s680_s21 = scalar_select %p550_p11, 1, 0 }
  0x13   : > { %s681_s22 = scalar_select %p554_p12, 1, 0 }
  0x14   : > { %s682_s23 = scalar_select %p558_p13, 1, 0 }
  0x15   : > { %p314_p2 = pneg %p558_p13  ;;  %s119_s24 = sand.u32 1, %s470_s11  }
  0x16   : > { %s304_s25 = sshll.u32 %s474_s12, 8  ;;  %p683_p6 = scmp.eq.s32.totalorder %s519_s13, 0 }
  0x17   : > { %p572_p7 = pnand %p327_p4, %p537_p5  ;;  %s291_s27 = sshll.u32 %s119_s24, 4 }
  0x18   : > { %p315_p0 = pnand %p314_p2, %p683_p6  ;;  %s476_s28 = smov [#allocation2]  }
  0x19   : > { %s582_s5 = scalar_lea.hbm %s672_s1, %s304_s25  ;;  %s123_s6 = scalar_lea.vmem [#allocation6], %s291_s27 }
  0x1a   : > { %317 = dma.hbm_to_smem (!%p315_p0), %s671_s0, 16, %s476_s28, [#allocation5]  }
  0x1b   : > { %s130_s7 = sshll.u32 %s123_s6, 4  ;;  %s586_s8 = scalar_lea.sflag [#allocation3], %s119_s24  ;;  %s584_s7 = int_to_ptr.vmem [resolvable:$true] %s130_s7 }
  0x1c   : > { %s378_s14 = scalar_lea.hbm %s582_s5, 256  ;;  %p380_p4 = pneg %p572_p7 }
  0x1d   : > { %p379_p3 = scmp.ne.s32.totalorder %s582_s5, %s378_s14  ;;  %s383_s19 = scalar_lea.hbm %s672_s1, 512 }
  0x1e   : > { %p384_p8 = scmp.lt.s32.totalorder %s582_s5, %s672_s1  ;;  %p385_p9 = scmp.lt.s32.totalorder %s383_s19, %s378_s14 }
  0x1f   : > { %p381_p5 = pnand %p380_p4, %p379_p3 }
  0x20   : > { %p386_p10 = por %p385_p9, %p384_p8 }
  0x21   : > { %p382_p6 = pneg %p381_p5 }
  0x23   : > { %p387_p2 = pnand %p386_p10, %p382_p6 }
  0x25   : > { %390 = shalt.err (!%p387_p2)
}
  0x26   : > { %s391_s24 = scalar_lea.vmem %s584_s7, 256  ;;  %s477_s27 = smov [#allocation6]  }
  0x27   : > { %p392_p0 = scmp.ne.s32.totalorder %s584_s7, %s391_s24  ;;  %s396_s29 = sshll.u32 %s477_s27, 4  ;;  %s397_s29 = int_to_ptr.vmem [resolvable:$false] %s396_s29 }
  0x28   : > { %s398_s30 = scalar_lea.vmem %s397_s29, 512  ;;  %p399_p5 = scmp.lt.s32.totalorder %s584_s7, %s397_s29 }
  0x29   : > { %p394_p1 = pnand %p392_p0, %p380_p4  ;;  %p400_p12 = scmp.lt.s32.totalorder %s398_s30, %s391_s24 }
  0x2b   : > { %p395_p3 = pneg %p394_p1  ;;  %p401_p11 = por %p400_p12, %p399_p5 }
  0x2d   : > { %p402_p13 = pnand %p401_p11, %p395_p3 }
  0x2f   : > { %405 = shalt.err (!%p402_p13)
}
  0x30   : > { %s478_s3 = smov 128   ;;  %s479_s4 = smov 8  }
  0x31   : > { %321 = dma.hbm_to_vmem [thread:$0]  (!%p572_p7), %s582_s5, 256, %s584_s7, %s586_s8, %s478_s3, %s478_s3, %s479_s4  }
  0x32   : > { %p685_p4 = scmp.ne.s32.totalorder %s682_s23, 0 }
  0x33   : > { %p686_p1 = scmp.eq.s32.totalorder (!%p685_p4), %s519_s13, 0 }
  0x34   : > { %142 = sbr.rel (%p685_p4) target bundleno = 91 (0x5b), region = 28 }
  0x39   : > { %449 = dma.done.wait (%p686_p1), [#allocation5], 16   ;;  %p687_p6 = pmov %p686_p1 }
  0x3a   : > { %s614_s6 = sand.u32 1, %s466_s10   ;;  %p688_p11 = scmp.ne.s32.totalorder %s679_s20, 0 }
  0x3b   : > { %451 = vsyncadd (%p687_p6), [#allocation5], 4294967280  ;;  %s296_s14 = sshll.u32 %s614_s6, 4  ;;  %s149_s16 = scalar_lea.sflag [#allocation3], %s614_s6 }
  0x3c   : > { %s152_s17 = scalar_lea.vmem [#allocation6], %s296_s14 }
  0x3d   : > { %453 = dma.done.wait (%p688_p11), %s149_s16, 256  }
  0x3e   : > { %455 = vsyncadd (%p688_p11), %s149_s16, 4294967040 }
  0x3f   : > { %157 = sfence }
  0x40   : > { %s178_s23 = sld [smem:[#allocation2]]  ;;  %v176_v0 = vld [vmem:[%s152_s17] sm:$0xff]  ;;  %s173_s5 = scalar_lea.vmem [#allocation7], %s296_s14  ;;  %v177_v1 = vld [vmem:[%s152_s17 + $0x8] sm:$0xff] }
  0x41   : > { %s298_s26 = sld [smem:[#allocation2 + $0x1]]  ;;  %s202_s7 = sshll.u32 %s173_s5, 4  ;;  %s623_s7 = int_to_ptr.vmem [resolvable:$true] %s202_s7 }
  0x42   : > { %s305_s8 = sshll.u32 %s519_s13, 8  ;;  %s189_s28 = scalar_lea.sflag [#allocation4], %s614_s6 }
  0x43   : > { %s628_s25 = scalar_lea.hbm %s673_s2, %s305_s8  ;;  %s406_s24 = scalar_lea.vmem %s623_s7, 256 }
  0x44   : > { %p407_p12 = scmp.ne.s32.totalorder %s623_s7, %s406_s24  ;;  %p689_p13 = scmp.ne.s32.totalorder %s680_s21, 0 }
  0x45   : > { %s480_s13 = smov [#allocation7]  }
  0x46   : > { %v179_v2 = vstv %s178_s23  ;;  %p408_p7 = pnand %p407_p12, %p689_p13  ;;  %s410_s27 = sshll.u32 %s480_s13, 4  ;;  %s411_s27 = int_to_ptr.vmem [resolvable:$false] %s410_s27 }
  0x47   : > { %v180_v3 = vmul.f32 %v179_v2, %v176_v0  ;;  %v183_v4 = vstv %s298_s26  ;;  %v181_v5 = vmul.f32 %v179_v2, %v177_v1  ;;  %s412_s29 = scalar_lea.vmem %s411_s27, 512  ;;  %p413_p9 = scmp.lt.s32.totalorder %s623_s7, %s411_s27 }
  0x48   : > { %p409_p8 = pneg %p408_p7  ;;  %p414_p10 = scmp.lt.s32.totalorder %s412_s29, %s406_s24 }
  0x49   : > { %v184_v6 = vadd.f32 %v183_v4, %v180_v3  ;;  %v185_v7 = vadd.f32 %v183_v4, %v181_v5 }
  0x4a   : > { %p415_p2 = por %p414_p10, %p413_p9 }
  0x4b   : > { %186 = vst [vmem:[%s173_s5] sm:$0xff] %v184_v6  ;;  %187 = vst [vmem:[%s173_s5 + $0x8] sm:$0xff] %v185_v7 }
  0x4c   : > { %p416_p0 = pnand %p415_p2, %p409_p8 }
  0x4e   : > { %419 = shalt.err (!%p416_p0)
}
  0x4f   : > { %s420_s30 = scalar_lea.hbm %s628_s25, 256  ;;  %s424_s14 = scalar_lea.hbm %s673_s2, 512 }
  0x50   : > { %p421_p3 = scmp.ne.s32.totalorder %s628_s25, %s420_s30  ;;  %p425_p1 = scmp.lt.s32.totalorder %s628_s25, %s673_s2 }
  0x51   : > { %p426_p6 = scmp.lt.s32.totalorder %s424_s14, %s420_s30 }
  0x52   : > { %p422_p5 = pnand %p421_p3, %p689_p13 }
  0x53   : > { %p427_p11 = por %p426_p6, %p425_p1 }
  0x54   : > { %p423_p4 = pneg %p422_p5 }
  0x56   : > { %p428_p12 = pnand %p427_p11, %p423_p4 }
  0x58   : > { %431 = shalt.err (!%p428_p12)
}
  0x59   : > { %s481_s23 = smov 128   ;;  %s482_s26 = smov 8  }
  0x5a   : > { %312 = dma.vmem_to_hbm [thread:$0]  (%p689_p13), %s623_s7, 256, %s628_s25, %s189_s28, %s481_s23, %s481_s23, %s482_s26  }
  0x5b PF: > { %s217_s5 = sand.u32 1, %s462_s9   ;;  %p690_p7 = scmp.ne.s32.totalorder %s681_s22, 0 }
  0x5c   : > { %p691_p8 = scmp.ge.s32.totalorder %s474_s12, 2  ;;  %s218_s8 = scalar_lea.sflag [#allocation4], %s217_s5 }
  0x5e   : > { %p323_p9 = pnand %p691_p8, %p690_p7 }
  0x60   : > { %p324_p10 = pneg %p323_p9 }
  0x62   : > { %457 = dma.done.wait (%p324_p10), %s218_s8, 256  }
  0x63   : > { %459 = vsyncadd (%p324_p10), %s218_s8, 4294967040  ;;  %p16_p2 = scmp.ge.s32.totalorder %s523_s15, 4   ;;  %s692_s9 = smov %s466_s10 }
  0x64   : > { %s693_s10 = smov %s470_s11  ;;  %s694_s11 = smov %s535_s18 }
  0x65   : > { %s695_s12 = smov %s523_s15  ;;  %18 = sbr.rel (!%p16_p2) target bundleno = 6 (0x6), region = 78 }
  0x6a   :  { %223 = vsyncpa [#allocation3], 1 }
  0x6b   :  { %225 = vsyncpa [#allocation3 + $0x1], 1 }
  0x6c   :  { %226 = vsyncpa [#allocation4], 1 }
  0x6d   :  { %228 = vsyncpa [#allocation4 + $0x1], 1 }
  0x6e   :  { %229 = vsyncpa [#allocation5], 1 }
  0x6f   :  { %231 = vsyncpa [#allocation5 + $0x1], 1 }

</bundles_post_ra>
